<compile_context>
chip_gen: v7x
topology: tpu7x:2x2x1
jax: 0.10.0
libtpu: 0.0.40
codegen_flags: <defaults>
</compile_context>

<pallas_src>
import functools

import jax
import jax.numpy as jnp
import numpy as np
from jax import lax
from jax.experimental import pallas as pl
from jax.experimental.pallas import tpu as pltpu


def _mfm_kernel(x_ref, w_ref, b_ref, o_ref, patches_ref, *,
                NB, Cin, Cout, H, W, KH, KW, pad, SUB):
    """Fused conv3x3 + bias + max-feature-map for NB images.

    x_ref:       (NB, Cin, H*W)        activations, spatial flattened on lanes
    w_ref:       (2*Cout, KH*KW*SUB)   weights, K padded to the sublane tile
    b_ref:       (2*Cout, 1)           bias (f32)
    o_ref:       (NB, Cout, H*W)       MFM output
    patches_ref: (KH*KW*SUB, H*W)      f32 im2col scratch (VMEM)
    """
    HW = H * W

    # Zero the scratch: rows [t*SUB+Cin, (t+1)*SUB) are never written and must
    # be 0 (their weight columns are 0 too, but 0 * garbage could be NaN/Inf).
    patches_ref[...] = jnp.zeros_like(patches_ref)

    # Per-lane flat spatial index and column index (static masks per tap).
    flat = lax.broadcasted_iota(jnp.int32, (1, HW), 1)
    if W & (W - 1) == 0:
        col = flat & (W - 1)
    else:
        col = jnp.remainder(flat, W)

    taps = []
    for kh in range(KH):
        for kw in range(KW):
            dh, dw = kh - pad, kw - pad
            # rolled[f] == x[f + dh*W + dw]  (mod H*W), jnp.roll convention.
            shift = (-(dh * W + dw)) % HW
            conds = []
            if dh < 0:
                conds.append(flat >= (-dh) * W)      # h + dh >= 0
            elif dh > 0:
                conds.append(flat < (H - dh) * W)    # h + dh <= H-1
            if dw < 0:
                conds.append(col >= (-dw))           # w + dw >= 0
            elif dw > 0:
                conds.append(col < (W - dw))         # w + dw <= W-1
            mask = None
            for c in conds:
                mask = c if mask is None else jnp.logical_and(mask, c)
            taps.append((shift, mask))

    w_mat = w_ref[...].astype(jnp.float32)   # (2*Cout, KH*KW*SUB), hoisted
    bias = b_ref[...]                        # (2*Cout, 1), f32

    for n in range(NB):                      # static unroll over images in block
        xn = x_ref[n]                        # (Cin, HW), lane-dense
        for t, (shift, mask) in enumerate(taps):
            piece = xn if shift == 0 else pltpu.roll(xn, shift, axis=1)
            if mask is not None:
                piece = jnp.where(mask, piece, jnp.zeros_like(piece))
            # Tile-aligned store: t*SUB is a multiple of 8.
            patches_ref[t * SUB:t * SUB + Cin, :] = piece.astype(jnp.float32)
        # One fused MXU contraction per image (K = KH*KW*SUB, lanes = H*W).
        acc = jnp.dot(w_mat, patches_ref[...],
                      preferred_element_type=jnp.float32)     # (2*Cout, HW)
        acc = acc + bias
        out = jnp.maximum(acc[:Cout, :], acc[Cout:, :])        # MFM
        o_ref[n] = out.astype(o_ref.dtype)


def _largest_divisor_leq(n, cap):
    for d in range(min(n, cap), 0, -1):
        if n % d == 0:
            return d
    return 1


def mfm_forward(x_nchw, w_oihw, bias, *, padding=1, compute_dtype=None,
                batch_block=8):
    """MFM forward: Conv2d(Cin, 2*Cout, 3, stride=1, pad=1) + channel-split max.

    x_nchw: (N, Cin, H, W);  w_oihw: (2*Cout, Cin, KH, KW);  bias: (2*Cout,).
    Returns (N, Cout, H, W) in the input dtype.
    """
    N, Cin, H, W = x_nchw.shape
    two_cout, cin_w, KH, KW = w_oihw.shape
    assert cin_w == Cin and two_cout % 2 == 0
    assert KH == KW and 2 * padding == KH - 1, "kernel assumes 'same' conv, stride 1"
    Cout = two_cout // 2
    HW = H * W
    SUB = ((Cin + 7) // 8) * 8            # pad K-rows to the f32 sublane tile
    K_pad = KH * KW * SUB
    if compute_dtype is None:
        compute_dtype = x_nchw.dtype

    # Metadata-only reshape: spatial goes onto the lane axis (no transpose/pad).
    x_flat = x_nchw.reshape(N, Cin, HW).astype(compute_dtype)
    # Weight rows match the patch-row order (kh, kw, ci), Cin zero-padded to SUB.
    w_r = jnp.transpose(w_oihw, (0, 2, 3, 1))               # (2Cout, KH, KW, Cin)
    if SUB != Cin:
        w_r = jnp.pad(w_r, ((0, 0), (0, 0), (0, 0), (0, SUB - Cin)))
    w_flat = w_r.reshape(two_cout, K_pad).astype(compute_dtype)
    b_col = bias.reshape(two_cout, 1).astype(jnp.float32)

    NB = _largest_divisor_leq(N, batch_block)   # images per grid step
    grid = (N // NB,)

    kernel = functools.partial(
        _mfm_kernel, NB=NB, Cin=Cin, Cout=Cout, H=H, W=W, KH=KH, KW=KW,
        pad=padding, SUB=SUB)

    itemsize = jnp.dtype(compute_dtype).itemsize
    out_itemsize = jnp.dtype(x_nchw.dtype).itemsize
    cost = pl.CostEstimate(
        flops=2 * N * HW * KH * KW * Cin * two_cout,
        transcendentals=0,
        bytes_accessed=(N * Cin * HW * itemsize
                        + two_cout * K_pad * itemsize
                        + two_cout * 4
                        + N * Cout * HW * out_itemsize),
    )

    out_flat = pl.pallas_call(
        kernel,
        out_shape=jax.ShapeDtypeStruct((N, Cout, HW), x_nchw.dtype),
        grid_spec=pltpu.PrefetchScalarGridSpec(
            num_scalar_prefetch=0,
            grid=grid,
            in_specs=[
                pl.BlockSpec((NB, Cin, HW), lambda i: (i, 0, 0)),
                pl.BlockSpec((two_cout, K_pad), lambda i: (0, 0)),
                pl.BlockSpec((two_cout, 1), lambda i: (0, 0)),
            ],
            out_specs=pl.BlockSpec((NB, Cout, HW), lambda i: (i, 0, 0)),
            scratch_shapes=[pltpu.VMEM((K_pad, HW), jnp.float32)],
        ),
        compiler_params=pltpu.CompilerParams(
            dimension_semantics=("parallel",)),
        cost_estimate=cost,
    )(x_flat, w_flat, b_col)

    return out_flat.reshape(N, Cout, H, W)


def _reference(x_nchw, w_oihw, bias, padding=1):
    """Pure-JAX reference matching torch Conv2d(pad=1) + MFM max."""
    y = lax.conv_general_dilated(
        x_nchw, w_oihw, window_strides=(1, 1),
        padding=((padding, padding), (padding, padding)),
        dimension_numbers=("NCHW", "OIHW", "NCHW"),
    ) + bias.reshape(1, -1, 1, 1)
    cout = y.shape[1] // 2
    return jnp.maximum(y[:, :cout], y[:, cout:])


if __name__ == "__main__":
    # mfm(in_channels=4, out_channels=8): small shapes consistent with the module.
    N, Cin, H, W = 2, 4, 16, 16
    Cout, KH, KW = 8, 3, 3

    key = jax.random.PRNGKey(0)
    kx, kw, kb = jax.random.split(key, 3)
    x = jax.random.normal(kx, (N, Cin, H, W), dtype=jnp.float32)
    fan_in = Cin * KH * KW
    w = jax.random.normal(kw, (2 * Cout, Cin, KH, KW), dtype=jnp.float32) / np.sqrt(fan_in)
    b = jax.random.normal(kb, (2 * Cout,), dtype=jnp.float32) * 0.1

    ref = jax.block_until_ready(_reference(x, w, b))

    # f32 path (exact semantics of the PyTorch module).
    out = jax.block_until_ready(mfm_forward(x, w, b))
    assert out.shape == (N, Cout, H, W), out.shape
    np.testing.assert_allclose(np.asarray(out), np.asarray(ref), rtol=1e-5, atol=1e-5)

    # bf16-operand path (halves HBM/DMA traffic on v6e/v7x; accumulation is f32).
    out_bf16 = jax.block_until_ready(
        mfm_forward(x, w, b, compute_dtype=jnp.bfloat16))
    np.testing.assert_allclose(np.asarray(out_bf16), np.asarray(ref),
                               rtol=5e-2, atol=5e-2)

    print("KERNEL_OK")
</pallas_src>

<mosaic_0001>
module attributes {stable_mosaic.version = 11 : i64} {
  func.func @_mfm_kernel(%arg0: i32, %arg1: memref<2x4x256xf32, #tpu.memory_space<vmem>>, %arg2: memref<16x72xf32, #tpu.memory_space<vmem>>, %arg3: memref<16x1xf32, #tpu.memory_space<vmem>>, %arg4: memref<2x8x256xf32, #tpu.memory_space<vmem>>, %arg5: memref<72x256xf32, #tpu.memory_space<vmem>>) attributes {dimension_semantics = [#tpu.dimension_semantics<parallel>], iteration_bounds = array<i64: 1>, scalar_prefetch = 0 : i64, scratch_operands = 1 : i64, tpu.core_type = #tpu.core_type<tc>, window_params = [{transform_indices = @transform_0, window_bounds = array<i64: 2, 4, 256>}, {pipeline_mode = #tpu.pipeline_mode<synchronous>, transform_indices = @transform_1, window_bounds = array<i64: 16, 72>}, {pipeline_mode = #tpu.pipeline_mode<synchronous>, transform_indices = @transform_2, window_bounds = array<i64: 16, 1>}, {transform_indices = @transform_3, window_bounds = array<i64: 2, 8, 256>}]} {
    %cst = arith.constant 0.000000e+00 : f32
    %0 = vector.broadcast %cst : f32 to vector<72x256xf32>
    %c0 = arith.constant 0 : index
    %c0_0 = arith.constant 0 : index
    %1 = vector.load %arg5[%c0, %c0_0] : memref<72x256xf32, #tpu.memory_space<vmem>>, vector<72x256xf32>
    tpu.vector_store %arg5[%c0, %c0_0], %0 {strides = array<i32>} : memref<72x256xf32, #tpu.memory_space<vmem>>, vector<72x256xf32>,
    %2 = tpu.iota {dimensions = array<i32: 1>} : vector<1x256xi32>
    %c15_i32 = arith.constant 15 : i32
    %3 = vector.broadcast %c15_i32 : i32 to vector<1x256xi32>
    %4 = arith.andi %2, %3 : vector<1x256xi32>
    %c16_i32 = arith.constant 16 : i32
    %5 = vector.broadcast %c16_i32 : i32 to vector<1x256xi32>
    %6 = arith.cmpi sge, %2, %5 : vector<1x256xi32>
    %c1_i32 = arith.constant 1 : i32
    %7 = vector.broadcast %c1_i32 : i32 to vector<1x256xi32>
    %8 = arith.cmpi sge, %4, %7 : vector<1x256xi32>
    %9 = arith.andi %6, %8 : vector<1x256xi1>
    %c16_i32_1 = arith.constant 16 : i32
    %10 = vector.broadcast %c16_i32_1 : i32 to vector<1x256xi32>
    %11 = arith.cmpi sge, %2, %10 : vector<1x256xi32>
    %c16_i32_2 = arith.constant 16 : i32
    %12 = vector.broadcast %c16_i32_2 : i32 to vector<1x256xi32>
    %13 = arith.cmpi sge, %2, %12 : vector<1x256xi32>
    %c15_i32_3 = arith.constant 15 : i32
    %14 = vector.broadcast %c15_i32_3 : i32 to vector<1x256xi32>
    %15 = arith.cmpi slt, %4, %14 : vector<1x256xi32>
    %16 = arith.andi %13, %15 : vector<1x256xi1>
    %c1_i32_4 = arith.constant 1 : i32
    %17 = vector.broadcast %c1_i32_4 : i32 to vector<1x256xi32>
    %18 = arith.cmpi sge, %4, %17 : vector<1x256xi32>
    %c15_i32_5 = arith.constant 15 : i32
    %19 = vector.broadcast %c15_i32_5 : i32 to vector<1x256xi32>
    %20 = arith.cmpi slt, %4, %19 : vector<1x256xi32>
    %c240_i32 = arith.constant 240 : i32
    %21 = vector.broadcast %c240_i32 : i32 to vector<1x256xi32>
    %22 = arith.cmpi slt, %2, %21 : vector<1x256xi32>
    %c1_i32_6 = arith.constant 1 : i32
    %23 = vector.broadcast %c1_i32_6 : i32 to vector<1x256xi32>
    %24 = arith.cmpi sge, %4, %23 : vector<1x256xi32>
    %25 = arith.andi %22, %24 : vector<1x256xi1>
    %c240_i32_7 = arith.constant 240 : i32
    %26 = vector.broadcast %c240_i32_7 : i32 to vector<1x256xi32>
    %27 = arith.cmpi slt, %2, %26 : vector<1x256xi32>
    %c240_i32_8 = arith.constant 240 : i32
    %28 = vector.broadcast %c240_i32_8 : i32 to vector<1x256xi32>
    %29 = arith.cmpi slt, %2, %28 : vector<1x256xi32>
    %c15_i32_9 = arith.constant 15 : i32
    %30 = vector.broadcast %c15_i32_9 : i32 to vector<1x256xi32>
    %31 = arith.cmpi slt, %4, %30 : vector<1x256xi32>
    %32 = arith.andi %29, %31 : vector<1x256xi1>
    %c0_10 = arith.constant 0 : index
    %c0_11 = arith.constant 0 : index
    %33 = vector.load %arg2[%c0_10, %c0_11] : memref<16x72xf32, #tpu.memory_space<vmem>>, vector<16x72xf32>
    %c0_12 = arith.constant 0 : index
    %c0_13 = arith.constant 0 : index
    %34 = vector.load %arg3[%c0_12, %c0_13] : memref<16x1xf32, #tpu.memory_space<vmem>>, vector<16x1xf32>
    %c0_14 = arith.constant 0 : index
    %c0_15 = arith.constant 0 : index
    %c0_16 = arith.constant 0 : index
    %35 = vector.load %arg1[%c0_14, %c0_15, %c0_16] : memref<2x4x256xf32, #tpu.memory_space<vmem>>, vector<1x4x256xf32>
    %36 = vector.shape_cast %35 : vector<1x4x256xf32> to vector<4x256xf32>
    %c17_i32 = arith.constant 17 : i32
    %37 = tpu.dynamic_rotate %36 by %c17_i32 dim 1 : vector<4x256xf32>, i32 -> vector<4x256xf32>
    %cst_17 = arith.constant 0.000000e+00 : f32
    %38 = vector.broadcast %cst_17 : f32 to vector<4x256xf32>
    %39 = vector.shape_cast %9 : vector<1x256xi1> to vector<1x256xi1>
    %40 = vector.broadcast %39 : vector<1x256xi1> to vector<4x256xi1>
    %41 = arith.select %40, %37, %38 : vector<4x256xi1>, vector<4x256xf32>
    %c0_18 = arith.constant 0 : index
    %c0_19 = arith.constant 0 : index
    %42 = vector.load %arg5[%c0_18, %c0_19] : memref<72x256xf32, #tpu.memory_space<vmem>>, vector<4x256xf32>
    tpu.vector_store %arg5[%c0_18, %c0_19], %41 {strides = array<i32>} : memref<72x256xf32, #tpu.memory_space<vmem>>, vector<4x256xf32>,
    %c16_i32_20 = arith.constant 16 : i32
    %43 = tpu.dynamic_rotate %36 by %c16_i32_20 dim 1 : vector<4x256xf32>, i32 -> vector<4x256xf32>
    %cst_21 = arith.constant 0.000000e+00 : f32
    %44 = vector.broadcast %cst_21 : f32 to vector<4x256xf32>
    %45 = vector.shape_cast %11 : vector<1x256xi1> to vector<1x256xi1>
    %46 = vector.broadcast %45 : vector<1x256xi1> to vector<4x256xi1>
    %47 = arith.select %46, %43, %44 : vector<4x256xi1>, vector<4x256xf32>
    %c8 = arith.constant 8 : index
    %c0_22 = arith.constant 0 : index
    %48 = vector.load %arg5[%c8, %c0_22] : memref<72x256xf32, #tpu.memory_space<vmem>>, vector<4x256xf32>
    tpu.vector_store %arg5[%c8, %c0_22], %47 {strides = array<i32>} : memref<72x256xf32, #tpu.memory_space<vmem>>, vector<4x256xf32>,
    %c15_i32_23 = arith.constant 15 : i32
    %49 = tpu.dynamic_rotate %36 by %c15_i32_23 dim 1 : vector<4x256xf32>, i32 -> vector<4x256xf32>
    %cst_24 = arith.constant 0.000000e+00 : f32
    %50 = vector.broadcast %cst_24 : f32 to vector<4x256xf32>
    %51 = vector.shape_cast %16 : vector<1x256xi1> to vector<1x256xi1>
    %52 = vector.broadcast %51 : vector<1x256xi1> to vector<4x256xi1>
    %53 = arith.select %52, %49, %50 : vector<4x256xi1>, vector<4x256xf32>
    %c16 = arith.constant 16 : index
    %c0_25 = arith.constant 0 : index
    %54 = vector.load %arg5[%c16, %c0_25] : memref<72x256xf32, #tpu.memory_space<vmem>>, vector<4x256xf32>
    tpu.vector_store %arg5[%c16, %c0_25], %53 {strides = array<i32>} : memref<72x256xf32, #tpu.memory_space<vmem>>, vector<4x256xf32>,
    %c1_i32_26 = arith.constant 1 : i32
    %55 = tpu.dynamic_rotate %36 by %c1_i32_26 dim 1 : vector<4x256xf32>, i32 -> vector<4x256xf32>
    %cst_27 = arith.constant 0.000000e+00 : f32
    %56 = vector.broadcast %cst_27 : f32 to vector<4x256xf32>
    %57 = vector.shape_cast %18 : vector<1x256xi1> to vector<1x256xi1>
    %58 = vector.broadcast %57 : vector<1x256xi1> to vector<4x256xi1>
    %59 = arith.select %58, %55, %56 : vector<4x256xi1>, vector<4x256xf32>
    %c24 = arith.constant 24 : index
    %c0_28 = arith.constant 0 : index
    %60 = vector.load %arg5[%c24, %c0_28] : memref<72x256xf32, #tpu.memory_space<vmem>>, vector<4x256xf32>
    tpu.vector_store %arg5[%c24, %c0_28], %59 {strides = array<i32>} : memref<72x256xf32, #tpu.memory_space<vmem>>, vector<4x256xf32>,
    %c32 = arith.constant 32 : index
    %c0_29 = arith.constant 0 : index
    %61 = vector.load %arg5[%c32, %c0_29] : memref<72x256xf32, #tpu.memory_space<vmem>>, vector<4x256xf32>
    tpu.vector_store %arg5[%c32, %c0_29], %36 {strides = array<i32>} : memref<72x256xf32, #tpu.memory_space<vmem>>, vector<4x256xf32>,
    %c255_i32 = arith.constant 255 : i32
    %62 = tpu.dynamic_rotate %36 by %c255_i32 dim 1 : vector<4x256xf32>, i32 -> vector<4x256xf32>
    %cst_30 = arith.constant 0.000000e+00 : f32
    %63 = vector.broadcast %cst_30 : f32 to vector<4x256xf32>
    %64 = vector.shape_cast %20 : vector<1x256xi1> to vector<1x256xi1>
    %65 = vector.broadcast %64 : vector<1x256xi1> to vector<4x256xi1>
    %66 = arith.select %65, %62, %63 : vector<4x256xi1>, vector<4x256xf32>
    %c40 = arith.constant 40 : index
    %c0_31 = arith.constant 0 : index
    %67 = vector.load %arg5[%c40, %c0_31] : memref<72x256xf32, #tpu.memory_space<vmem>>, vector<4x256xf32>
    tpu.vector_store %arg5[%c40, %c0_31], %66 {strides = array<i32>} : memref<72x256xf32, #tpu.memory_space<vmem>>, vector<4x256xf32>,
    %c241_i32 = arith.constant 241 : i32
    %68 = tpu.dynamic_rotate %36 by %c241_i32 dim 1 : vector<4x256xf32>, i32 -> vector<4x256xf32>
    %cst_32 = arith.constant 0.000000e+00 : f32
    %69 = vector.broadcast %cst_32 : f32 to vector<4x256xf32>
    %70 = vector.shape_cast %25 : vector<1x256xi1> to vector<1x256xi1>
    %71 = vector.broadcast %70 : vector<1x256xi1> to vector<4x256xi1>
    %72 = arith.select %71, %68, %69 : vector<4x256xi1>, vector<4x256xf32>
    %c48 = arith.constant 48 : index
    %c0_33 = arith.constant 0 : index
    %73 = vector.load %arg5[%c48, %c0_33] : memref<72x256xf32, #tpu.memory_space<vmem>>, vector<4x256xf32>
    tpu.vector_store %arg5[%c48, %c0_33], %72 {strides = array<i32>} : memref<72x256xf32, #tpu.memory_space<vmem>>, vector<4x256xf32>,
    %c240_i32_34 = arith.constant 240 : i32
    %74 = tpu.dynamic_rotate %36 by %c240_i32_34 dim 1 : vector<4x256xf32>, i32 -> vector<4x256xf32>
    %cst_35 = arith.constant 0.000000e+00 : f32
    %75 = vector.broadcast %cst_35 : f32 to vector<4x256xf32>
    %76 = vector.shape_cast %27 : vector<1x256xi1> to vector<1x256xi1>
    %77 = vector.broadcast %76 : vector<1x256xi1> to vector<4x256xi1>
    %78 = arith.select %77, %74, %75 : vector<4x256xi1>, vector<4x256xf32>
    %c56 = arith.constant 56 : index
    %c0_36 = arith.constant 0 : index
    %79 = vector.load %arg5[%c56, %c0_36] : memref<72x256xf32, #tpu.memory_space<vmem>>, vector<4x256xf32>
    tpu.vector_store %arg5[%c56, %c0_36], %78 {strides = array<i32>} : memref<72x256xf32, #tpu.memory_space<vmem>>, vector<4x256xf32>,
    %c239_i32 = arith.constant 239 : i32
    %80 = tpu.dynamic_rotate %36 by %c239_i32 dim 1 : vector<4x256xf32>, i32 -> vector<4x256xf32>
    %cst_37 = arith.constant 0.000000e+00 : f32
    %81 = vector.broadcast %cst_37 : f32 to vector<4x256xf32>
    %82 = vector.shape_cast %32 : vector<1x256xi1> to vector<1x256xi1>
    %83 = vector.broadcast %82 : vector<1x256xi1> to vector<4x256xi1>
    %84 = arith.select %83, %80, %81 : vector<4x256xi1>, vector<4x256xf32>
    %c64 = arith.constant 64 : index
    %c0_38 = arith.constant 0 : index
    %85 = vector.load %arg5[%c64, %c0_38] : memref<72x256xf32, #tpu.memory_space<vmem>>, vector<4x256xf32>
    tpu.vector_store %arg5[%c64, %c0_38], %84 {strides = array<i32>} : memref<72x256xf32, #tpu.memory_space<vmem>>, vector<4x256xf32>,
    %c0_39 = arith.constant 0 : index
    %c0_40 = arith.constant 0 : index
    %86 = vector.load %arg5[%c0_39, %c0_40] : memref<72x256xf32, #tpu.memory_space<vmem>>, vector<72x256xf32>
    %cst_41 = arith.constant dense<0.000000e+00> : vector<16x256xf32>
    %87 = tpu.matmul %33, %86, %cst_41 {dimension_numbers = #tpu.dot_dimension_numbers<[1], [0], [0], [1], [0, 0, 1, 1], [], []>} : vector<16x72xf32>, vector<72x256xf32>, vector<16x256xf32> -> vector<16x256xf32>
    %88 = vector.broadcast %34 : vector<16x1xf32> to vector<16x256xf32>
    %89 = arith.addf %87, %88 : vector<16x256xf32>
    %90 = vector.extract_strided_slice %89 {offsets = [0, 0], sizes = [8, 256], strides = [1, 1]} : vector<16x256xf32> to vector<8x256xf32>
    %91 = vector.extract_strided_slice %89 {offsets = [8, 0], sizes = [8, 256], strides = [1, 1]} : vector<16x256xf32> to vector<8x256xf32>
    %92 = arith.maximumf %90, %91 : vector<8x256xf32>
    %c0_42 = arith.constant 0 : index
    %c0_43 = arith.constant 0 : index
    %c0_44 = arith.constant 0 : index
    %93 = vector.load %arg4[%c0_42, %c0_43, %c0_44] : memref<2x8x256xf32, #tpu.memory_space<vmem>>, vector<1x8x256xf32>
    %94 = vector.shape_cast %93 : vector<1x8x256xf32> to vector<8x256xf32>
    %95 = vector.shape_cast %92 : vector<8x256xf32> to vector<1x8x256xf32>
    tpu.vector_store %arg4[%c0_42, %c0_43, %c0_44], %95 {strides = array<i32>} : memref<2x8x256xf32, #tpu.memory_space<vmem>>, vector<1x8x256xf32>,
    %c1 = arith.constant 1 : index
    %c0_45 = arith.constant 0 : index
    %c0_46 = arith.constant 0 : index
    %96 = vector.load %arg1[%c1, %c0_45, %c0_46] : memref<2x4x256xf32, #tpu.memory_space<vmem>>, vector<1x4x256xf32>
    %97 = vector.shape_cast %96 : vector<1x4x256xf32> to vector<4x256xf32>
    %c17_i32_47 = arith.constant 17 : i32
    %98 = tpu.dynamic_rotate %97 by %c17_i32_47 dim 1 : vector<4x256xf32>, i32 -> vector<4x256xf32>
    %cst_48 = arith.constant 0.000000e+00 : f32
    %99 = vector.broadcast %cst_48 : f32 to vector<4x256xf32>
    %100 = vector.shape_cast %9 : vector<1x256xi1> to vector<1x256xi1>
    %101 = vector.broadcast %100 : vector<1x256xi1> to vector<4x256xi1>
    %102 = arith.select %101, %98, %99 : vector<4x256xi1>, vector<4x256xf32>
    %c0_49 = arith.constant 0 : index
    %c0_50 = arith.constant 0 : index
    %103 = vector.load %arg5[%c0_49, %c0_50] : memref<72x256xf32, #tpu.memory_space<vmem>>, vector<4x256xf32>
    tpu.vector_store %arg5[%c0_49, %c0_50], %102 {strides = array<i32>} : memref<72x256xf32, #tpu.memory_space<vmem>>, vector<4x256xf32>,
    %c16_i32_51 = arith.constant 16 : i32
    %104 = tpu.dynamic_rotate %97 by %c16_i32_51 dim 1 : vector<4x256xf32>, i32 -> vector<4x256xf32>
    %cst_52 = arith.constant 0.000000e+00 : f32
    %105 = vector.broadcast %cst_52 : f32 to vector<4x256xf32>
    %106 = vector.shape_cast %11 : vector<1x256xi1> to vector<1x256xi1>
    %107 = vector.broadcast %106 : vector<1x256xi1> to vector<4x256xi1>
    %108 = arith.select %107, %104, %105 : vector<4x256xi1>, vector<4x256xf32>
    %c8_53 = arith.constant 8 : index
    %c0_54 = arith.constant 0 : index
    %109 = vector.load %arg5[%c8_53, %c0_54] : memref<72x256xf32, #tpu.memory_space<vmem>>, vector<4x256xf32>
    tpu.vector_store %arg5[%c8_53, %c0_54], %108 {strides = array<i32>} : memref<72x256xf32, #tpu.memory_space<vmem>>, vector<4x256xf32>,
    %c15_i32_55 = arith.constant 15 : i32
    %110 = tpu.dynamic_rotate %97 by %c15_i32_55 dim 1 : vector<4x256xf32>, i32 -> vector<4x256xf32>
    %cst_56 = arith.constant 0.000000e+00 : f32
    %111 = vector.broadcast %cst_56 : f32 to vector<4x256xf32>
    %112 = vector.shape_cast %16 : vector<1x256xi1> to vector<1x256xi1>
    %113 = vector.broadcast %112 : vector<1x256xi1> to vector<4x256xi1>
    %114 = arith.select %113, %110, %111 : vector<4x256xi1>, vector<4x256xf32>
    %c16_57 = arith.constant 16 : index
    %c0_58 = arith.constant 0 : index
    %115 = vector.load %arg5[%c16_57, %c0_58] : memref<72x256xf32, #tpu.memory_space<vmem>>, vector<4x256xf32>
    tpu.vector_store %arg5[%c16_57, %c0_58], %114 {strides = array<i32>} : memref<72x256xf32, #tpu.memory_space<vmem>>, vector<4x256xf32>,
    %c1_i32_59 = arith.constant 1 : i32
    %116 = tpu.dynamic_rotate %97 by %c1_i32_59 dim 1 : vector<4x256xf32>, i32 -> vector<4x256xf32>
    %cst_60 = arith.constant 0.000000e+00 : f32
    %117 = vector.broadcast %cst_60 : f32 to vector<4x256xf32>
    %118 = vector.shape_cast %18 : vector<1x256xi1> to vector<1x256xi1>
    %119 = vector.broadcast %118 : vector<1x256xi1> to vector<4x256xi1>
    %120 = arith.select %119, %116, %117 : vector<4x256xi1>, vector<4x256xf32>
    %c24_61 = arith.constant 24 : index
    %c0_62 = arith.constant 0 : index
    %121 = vector.load %arg5[%c24_61, %c0_62] : memref<72x256xf32, #tpu.memory_space<vmem>>, vector<4x256xf32>
    tpu.vector_store %arg5[%c24_61, %c0_62], %120 {strides = array<i32>} : memref<72x256xf32, #tpu.memory_space<vmem>>, vector<4x256xf32>,
    %c32_63 = arith.constant 32 : index
    %c0_64 = arith.constant 0 : index
    %122 = vector.load %arg5[%c32_63, %c0_64] : memref<72x256xf32, #tpu.memory_space<vmem>>, vector<4x256xf32>
    tpu.vector_store %arg5[%c32_63, %c0_64], %97 {strides = array<i32>} : memref<72x256xf32, #tpu.memory_space<vmem>>, vector<4x256xf32>,
    %c255_i32_65 = arith.constant 255 : i32
    %123 = tpu.dynamic_rotate %97 by %c255_i32_65 dim 1 : vector<4x256xf32>, i32 -> vector<4x256xf32>
    %cst_66 = arith.constant 0.000000e+00 : f32
    %124 = vector.broadcast %cst_66 : f32 to vector<4x256xf32>
    %125 = vector.shape_cast %20 : vector<1x256xi1> to vector<1x256xi1>
    %126 = vector.broadcast %125 : vector<1x256xi1> to vector<4x256xi1>
    %127 = arith.select %126, %123, %124 : vector<4x256xi1>, vector<4x256xf32>
    %c40_67 = arith.constant 40 : index
    %c0_68 = arith.constant 0 : index
    %128 = vector.load %arg5[%c40_67, %c0_68] : memref<72x256xf32, #tpu.memory_space<vmem>>, vector<4x256xf32>
    tpu.vector_store %arg5[%c40_67, %c0_68], %127 {strides = array<i32>} : memref<72x256xf32, #tpu.memory_space<vmem>>, vector<4x256xf32>,
    %c241_i32_69 = arith.constant 241 : i32
    %129 = tpu.dynamic_rotate %97 by %c241_i32_69 dim 1 : vector<4x256xf32>, i32 -> vector<4x256xf32>
    %cst_70 = arith.constant 0.000000e+00 : f32
    %130 = vector.broadcast %cst_70 : f32 to vector<4x256xf32>
    %131 = vector.shape_cast %25 : vector<1x256xi1> to vector<1x256xi1>
    %132 = vector.broadcast %131 : vector<1x256xi1> to vector<4x256xi1>
    %133 = arith.select %132, %129, %130 : vector<4x256xi1>, vector<4x256xf32>
    %c48_71 = arith.constant 48 : index
    %c0_72 = arith.constant 0 : index
    %134 = vector.load %arg5[%c48_71, %c0_72] : memref<72x256xf32, #tpu.memory_space<vmem>>, vector<4x256xf32>
    tpu.vector_store %arg5[%c48_71, %c0_72], %133 {strides = array<i32>} : memref<72x256xf32, #tpu.memory_space<vmem>>, vector<4x256xf32>,
    %c240_i32_73 = arith.constant 240 : i32
    %135 = tpu.dynamic_rotate %97 by %c240_i32_73 dim 1 : vector<4x256xf32>, i32 -> vector<4x256xf32>
    %cst_74 = arith.constant 0.000000e+00 : f32
    %136 = vector.broadcast %cst_74 : f32 to vector<4x256xf32>
    %137 = vector.shape_cast %27 : vector<1x256xi1> to vector<1x256xi1>
    %138 = vector.broadcast %137 : vector<1x256xi1> to vector<4x256xi1>
    %139 = arith.select %138, %135, %136 : vector<4x256xi1>, vector<4x256xf32>
    %c56_75 = arith.constant 56 : index
    %c0_76 = arith.constant 0 : index
    %140 = vector.load %arg5[%c56_75, %c0_76] : memref<72x256xf32, #tpu.memory_space<vmem>>, vector<4x256xf32>
    tpu.vector_store %arg5[%c56_75, %c0_76], %139 {strides = array<i32>} : memref<72x256xf32, #tpu.memory_space<vmem>>, vector<4x256xf32>,
    %c239_i32_77 = arith.constant 239 : i32
    %141 = tpu.dynamic_rotate %97 by %c239_i32_77 dim 1 : vector<4x256xf32>, i32 -> vector<4x256xf32>
    %cst_78 = arith.constant 0.000000e+00 : f32
    %142 = vector.broadcast %cst_78 : f32 to vector<4x256xf32>
    %143 = vector.shape_cast %32 : vector<1x256xi1> to vector<1x256xi1>
    %144 = vector.broadcast %143 : vector<1x256xi1> to vector<4x256xi1>
    %145 = arith.select %144, %141, %142 : vector<4x256xi1>, vector<4x256xf32>
    %c64_79 = arith.constant 64 : index
    %c0_80 = arith.constant 0 : index
    %146 = vector.load %arg5[%c64_79, %c0_80] : memref<72x256xf32, #tpu.memory_space<vmem>>, vector<4x256xf32>
    tpu.vector_store %arg5[%c64_79, %c0_80], %145 {strides = array<i32>} : memref<72x256xf32, #tpu.memory_space<vmem>>, vector<4x256xf32>,
    %c0_81 = arith.constant 0 : index
    %c0_82 = arith.constant 0 : index
    %147 = vector.load %arg5[%c0_81, %c0_82] : memref<72x256xf32, #tpu.memory_space<vmem>>, vector<72x256xf32>
    %cst_83 = arith.constant dense<0.000000e+00> : vector<16x256xf32>
    %148 = tpu.matmul %33, %147, %cst_83 {dimension_numbers = #tpu.dot_dimension_numbers<[1], [0], [0], [1], [0, 0, 1, 1], [], []>} : vector<16x72xf32>, vector<72x256xf32>, vector<16x256xf32> -> vector<16x256xf32>
    %149 = vector.broadcast %34 : vector<16x1xf32> to vector<16x256xf32>
    %150 = arith.addf %148, %149 : vector<16x256xf32>
    %151 = vector.extract_strided_slice %150 {offsets = [0, 0], sizes = [8, 256], strides = [1, 1]} : vector<16x256xf32> to vector<8x256xf32>
    %152 = vector.extract_strided_slice %150 {offsets = [8, 0], sizes = [8, 256], strides = [1, 1]} : vector<16x256xf32> to vector<8x256xf32>
    %153 = arith.maximumf %151, %152 : vector<8x256xf32>
    %c1_84 = arith.constant 1 : index
    %c0_85 = arith.constant 0 : index
    %c0_86 = arith.constant 0 : index
    %154 = vector.load %arg4[%c1_84, %c0_85, %c0_86] : memref<2x8x256xf32, #tpu.memory_space<vmem>>, vector<1x8x256xf32>
    %155 = vector.shape_cast %154 : vector<1x8x256xf32> to vector<8x256xf32>
    %156 = vector.shape_cast %153 : vector<8x256xf32> to vector<1x8x256xf32>
    tpu.vector_store %arg4[%c1_84, %c0_85, %c0_86], %156 {strides = array<i32>} : memref<2x8x256xf32, #tpu.memory_space<vmem>>, vector<1x8x256xf32>,
    return
  }
  func.func @transform_0(%arg0: i32) -> (i32, i32, i32) {
    %c0_i32 = arith.constant 0 : i32
    %c0_i32_0 = arith.constant 0 : i32
    %c0_i32_1 = arith.constant 0 : i32
    return %arg0, %c0_i32, %c0_i32_0 : i32, i32, i32
  }
  func.func @transform_1(%arg0: i32) -> (i32, i32) {
    %c0_i32 = arith.constant 0 : i32
    %c0_i32_0 = arith.constant 0 : i32
    %c0_i32_1 = arith.constant 0 : i32
    return %c0_i32, %c0_i32_0 : i32, i32
  }
  func.func @transform_2(%arg0: i32) -> (i32, i32) {
    %c0_i32 = arith.constant 0 : i32
    %c0_i32_0 = arith.constant 0 : i32
    %c0_i32_1 = arith.constant 0 : i32
    return %c0_i32, %c0_i32_0 : i32, i32
  }
  func.func @transform_3(%arg0: i32) -> (i32, i32, i32) {
    %c0_i32 = arith.constant 0 : i32
    %c0_i32_0 = arith.constant 0 : i32
    %c0_i32_1 = arith.constant 0 : i32
    return %arg0, %c0_i32, %c0_i32_0 : i32, i32, i32
  }
}

</mosaic_0001>

<bundles_post_ra>
// kernel: tpu_custom_call.1
= control target key start
LH: loop header
LB: loop body
LE: loop exit
PB: predicated region body
PF: predicated region fallthrough
CT: control target
= control target key end

     0   :  { %8 = vsyncpa [#allocation4], 0  ;;  %s915_s0 = inlined_call_operand.vmem [shape: f32[2,4,256], index: 0, kind: input, shape index: {}]   ;;  %s916_s1 = inlined_call_operand.hbm [shape: f32[16,72], index: 1, kind: input, shape index: {}]   ;;  %s917_s2 = inlined_call_operand.vmem [shape: f32[16,1], index: 2, kind: input, shape index: {}]   ;;  %s918_s3 = inlined_call_operand.hbm [shape: f32[2,8,256], index: 3, kind: output, shape index: {}]  }
   0x1   :  { %9 = vsyncpa [#allocation5], 0  ;;  %s622_s12 = smov [#allocation3]   ;;  %s574_s16 = scalar_lea.hbm %s916_s1, 256 }
   0x2   :  { %s17_s13 = sshll.u32 %s622_s12, 4  ;;  %p575_p0 = scmp.ne.s32.totalorder %s916_s1, %s574_s16  ;;  %s18_s13 = int_to_ptr.vmem [resolvable:$true] %s17_s13 }
   0x3   :  { %p578_p1 = scmp.lt.u32.totalorder %s574_s16, %s916_s1 }
   0x5   :  { %p580_p2 = pnand %p578_p1, %p575_p0 }
   0x7   :  { %583 = shalt.err (!%p580_p2)
}
   0x8   :  { %s584_s21 = scalar_lea.vmem %s18_s13, 256  ;;  %p589_p4 = scmp.lt.s32.totalorder %s18_s13, %s18_s13 }
   0x9   :  { %p585_p3 = scmp.ne.s32.totalorder %s18_s13, %s584_s21  ;;  %p590_p5 = scmp.lt.s32.totalorder %s584_s21, %s584_s21 }
   0xb   :  { %p591_p6 = por %p590_p5, %p589_p4 }
   0xd   :  { %p592_p7 = pnand %p591_p6, %p585_p3 }
   0xf   :  { %595 = shalt.err (!%p592_p7)
}
  0x10   :  { %s623_s22 = smov 128   ;;  %s624_s23 = smov 8  }
  0x11   :  { %23 = dma.hbm_to_vmem [thread:$0]  %s916_s1, 256, %s18_s13, [#allocation4], %s623_s22, %s623_s22, %s624_s23  }
  0x12   :  { %618 = dma.done.wait [#allocation4], 256  }
  0x13   :  { %619 = vsyncadd [#allocation4], 4294967040  ;;  %v625_v0 = vmov 0.0   ;;  %v72_v1 = vld [vmem:[%s915_s0] sm:$0xff]  ;;  %s626_s27 = smov 16   ;;  %s627_s28 = smov 17   ;;  %v47_v10 = vlaneseq }
  0x14   :  { %31 = vst [vmem:[#allocation2 + $0x10] sm:$0xff] %v625_v0  ;;  %32 = vst [vmem:[#allocation2 + $0x18] sm:$0xff] %v625_v0  ;;  %297 = vmatprep.mubr.f32.mxu0 %v625_v0  ;;  %483 = vmatprep.mubr.f32.mxu1 %v625_v0  ;;  %v74_v2 = vcombine.high %v72_v1, %v72_v1  ;;  %s628_s29 = smov 15   ;;  %v520_v3 = vld [vmem:[%s915_s0 + $0x8] sm:$0xff]  ;;  %s629_s5 = smov 1   ;;  %v70_v8 = vld [vmem:[%s917_s2] sm:$0xff] }
  0x15   :  { %29 = vst [vmem:[#allocation2] sm:$0xff] %v625_v0  ;;  %30 = vst [vmem:[#allocation2 + $0x8] sm:$0xff] %v625_v0  ;;  %91 = vrot.lane.b32.xlu1 %v72_v1, %s626_s27  ;;  %76 = vrot.lane.b32.xlu0 %v72_v1, %s627_s28  ;;  %v317_v4 = vcombine.high %v520_v3, %v520_v3  ;;  %s630_s6 = smov 127   ;;  %s631_s0 = smov 113   ;;  %v71_v7 = vld [vmem:[%s917_s2 + $0x8] sm:$0xff]  ;;  %v634_v9 = vmov 0  }
  0x16   :  { %33 = vst [vmem:[#allocation2 + $0x20] sm:$0xff] %v625_v0  ;;  %34 = vst [vmem:[#allocation2 + $0x28] sm:$0xff] %v625_v0  ;;  %s632_s7 = smov 112   ;;  %s633_s8 = smov 111   ;;  %571 = vset.pattern.permute.xlu1 %v634_v9  ;;  %570 = vset.pattern.permute.xlu0 %v634_v9  ;;  %v709_v11 = vand.u32 127, %v47_v10 }
  0x17   :  { %35 = vst [vmem:[#allocation2 + $0x30] sm:$0xff] %v625_v0  ;;  %36 = vst [vmem:[#allocation2 + $0x38] sm:$0xff] %v625_v0  ;;  %s635_s2 = smov [#allocation6]  }
  0x18   :  { %37 = vst [vmem:[#allocation2 + $0x40] sm:$0xff] %v625_v0  ;;  %38 = vst [vmem:[#allocation2 + $0x48] sm:$0xff] %v625_v0  ;;  %v712_v12 = vadd.s32 128, %v709_v11  ;;  %v50_v13 = vand.u32 15, %v709_v11  ;;  %vm95_vm0 = vcmp.lt.s32.totalorder %v709_v11, 16  ;;  %vm52_vm1 = vcmp.ge.s32.totalorder %v709_v11, 16 }
  0x19   :  { %39 = vst [vmem:[#allocation2 + $0x50] sm:$0xff] %v625_v0  ;;  %40 = vst [vmem:[#allocation2 + $0x58] sm:$0xff] %v625_v0  ;;  %106 = vrot.lane.b32.xlu0 %v72_v1, %s628_s29  ;;  %93 = vrot.lane.b32.xlu1 %v74_v2, %s626_s27  ;;  %vm110_vm5 = vcmp.lt.s32.totalorder %v709_v11, 15  ;;  %vm80_vm6 = vcmp.lt.s32.totalorder %v709_v11, 17  ;;  %vm125_vm10 = vcmp.lt.s32.totalorder %v709_v11, 1  ;;  %vm142_vm11 = vcmp.lt.s32.totalorder %v709_v11, 127 }
  0x1a   :  { %41 = vst [vmem:[#allocation2 + $0x60] sm:$0xff] %v625_v0  ;;  %42 = vst [vmem:[#allocation2 + $0x68] sm:$0xff] %v625_v0  ;;  %v51_v16 = vand.u32 15, %v712_v12  ;;  %vm718_vm2 = vcmp.lt.s32.totalorder %v50_v13, 15  ;;  %vm722_vm3 = vcmp.ge.s32.totalorder %v50_v13, 1  ;;  %vm63_vm12 = vcmp.lt.s32.totalorder %v712_v12, 240 }
  0x1b   :  { %43 = vst [vmem:[#allocation2 + $0x70] sm:$0xff] %v625_v0  ;;  %44 = vst [vmem:[#allocation2 + $0x78] sm:$0xff] %v625_v0  ;;  %vm157_vm13 = vcmp.lt.s32.totalorder %v709_v11, 113  ;;  %vm172_vm15 = vcmp.lt.s32.totalorder %v709_v11, 112  ;;  %s506_s13 = sshll.u32 %s635_s2, 4  ;;  %s507_s13 = int_to_ptr.vmem [resolvable:$true] %s506_s13 }
  0x1c   :  { %45 = vst [vmem:[#allocation2 + $0x80] sm:$0xff] %v625_v0  ;;  %46 = vst [vmem:[#allocation2 + $0x88] sm:$0xff] %v625_v0  ;;  %vm742_vm7 = vcmp.lt.s32.totalorder %v51_v16, 15  ;;  %vm746_vm8 = vcmp.ge.s32.totalorder %v51_v16, 1  ;;  %s596_s14 = scalar_lea.vmem %s507_s13, 512  ;;  %p601_p9 = scmp.lt.s32.totalorder %s507_s13, %s507_s13 }
  0x1d   :  { %136 = vst [vmem:[#allocation2 + $0x40] sm:$0xf] %v72_v1  ;;  %137 = vst [vmem:[#allocation2 + $0x48] sm:$0xf] %v74_v2  ;;  %108 = vrot.lane.b32.xlu1 %v74_v2, %s628_s29  ;;  %78 = vrot.lane.b32.xlu0 %v74_v2, %s627_s28  ;;  %p597_p8 = scmp.ne.s32.totalorder %s507_s13, %s596_s14  ;;  %p602_p10 = scmp.lt.s32.totalorder %s596_s14, %s596_s14 }
  0x1e   :  { %vm736_vm4 = vmand %vm52_vm1, %vm718_vm2 }
  0x1f   :  { %vm754_vm9 = vmand %vm52_vm1, %vm722_vm3  ;;  %p603_p11 = por %p602_p10, %p601_p9 }
  0x20   :  { %vm812_vm14 = vmand %vm63_vm12, %vm746_vm8 }
  0x21   :  { %123 = vrot.lane.b32.xlu1 %v74_v2, %s629_s5  ;;  %121 = vrot.lane.b32.xlu0 %v72_v1, %s629_s5  ;;  %p604_p12 = pnand %p603_p11, %p597_p8 }
  0x24   :  { %v697_v5 = vld [vmem:[#allocation2 + $0x48] sm:$0xff]  ;;  %v699_v6 = vld [vmem:[#allocation2 + $0x40] sm:$0xff] }
  0x25   :  { %360 = vst [vmem:[#allocation2 + $0x48] sm:$0xf] %v317_v4  ;;  %359 = vst [vmem:[#allocation2 + $0x40] sm:$0xf] %v520_v3  ;;  %140 = vrot.lane.b32.xlu1 %v74_v2, %s630_s6  ;;  %138 = vrot.lane.b32.xlu0 %v72_v1, %s630_s6 }
  0x29   :  { %321 = vrot.lane.b32.xlu1 %v317_v4, %s627_s28  ;;  %319 = vrot.lane.b32.xlu0 %v520_v3, %s627_s28 }
  0x2d   :  { %331 = vrot.lane.b32.xlu1 %v317_v4, %s626_s27  ;;  %329 = vrot.lane.b32.xlu0 %v520_v3, %s626_s27 }
  0x31   :  { %155 = vrot.lane.b32.xlu1 %v74_v2, %s631_s0  ;;  %153 = vrot.lane.b32.xlu0 %v72_v1, %s631_s0 }
  0x35   :  { %170 = vrot.lane.b32.xlu1 %v74_v2, %s632_s7  ;;  %168 = vrot.lane.b32.xlu0 %v72_v1, %s632_s7 }
  0x39   :  { %341 = vrot.lane.b32.xlu1 %v317_v4, %s628_s29  ;;  %339 = vrot.lane.b32.xlu0 %v520_v3, %s628_s29 }
  0x3d   :  { %351 = vrot.lane.b32.xlu1 %v317_v4, %s629_s5  ;;  %349 = vrot.lane.b32.xlu0 %v520_v3, %s629_s5 }
  0x41   :  { %363 = vrot.lane.b32.xlu1 %v317_v4, %s630_s6  ;;  %361 = vrot.lane.b32.xlu0 %v520_v3, %s630_s6 }
  0x45   :  { %185 = vrot.lane.b32.xlu1 %v74_v2, %s633_s8  ;;  %183 = vrot.lane.b32.xlu0 %v72_v1, %s633_s8 }
  0x49   :  { %373 = vrot.lane.b32.xlu1 %v317_v4, %s631_s0  ;;  %371 = vrot.lane.b32.xlu0 %v520_v3, %s631_s0 }
  0x4d   :  { %383 = vrot.lane.b32.xlu1 %v317_v4, %s632_s7  ;;  %381 = vrot.lane.b32.xlu0 %v520_v3, %s632_s7 }
  0x51   :  { %393 = vrot.lane.b32.xlu1 %v317_v4, %s633_s8  ;;  %391 = vrot.lane.b32.xlu0 %v520_v3, %s633_s8 }
  0x55   :  { %223 = vperm.xlu1 %571, %v71_v7   ;;  %218 = vperm.xlu0 %570, %v70_v8  }
  0x87   :  { %v92_v14 = vpop.permute.xlu1 %91  ;;  %v77_v15 = vpop.permute.xlu0 %76 }
  0x8b   :  { %v107_v18 = vpop.permute.xlu0 %106  ;;  %v94_v19 = vpop.permute.xlu1 %93 }
  0x8c   :  { %v96_v21 = vsel %vm95_vm0, %v92_v14, %v94_v19  ;;  %v97_v22 = vsel %vm95_vm0, %v94_v19, %v92_v14 }
  0x8d   :  { %v102_v23 = vsel %vm52_vm1, %v97_v22, 0.0  ;;  %105 = vst [vmem:[#allocation2 + $0x18] sm:$0xf] %v96_v21 }
  0x8e   :  { %104 = vst [vmem:[#allocation2 + $0x10] sm:$0xf] %v102_v23 }
  0x8f   :  { %v109_v28 = vpop.permute.xlu1 %108  ;;  %v79_v29 = vpop.permute.xlu0 %78 }
  0x90   :  { %v111_v30 = vsel %vm110_vm5, %v107_v18, %v109_v28  ;;  %v112_v31 = vsel %vm110_vm5, %v109_v28, %v107_v18  ;;  %v81_v32 = vsel %vm80_vm6, %v77_v15, %v79_v29  ;;  %v82_v33 = vsel %vm80_vm6, %v79_v29, %v77_v15 }
  0x91   :  { %v117_v34 = vsel %vm736_vm4, %v112_v31, 0.0  ;;  %v118_v35 = vsel %vm742_vm7, %v111_v30, 0.0  ;;  %v87_v36 = vsel %vm754_vm9, %v82_v33, 0.0  ;;  %v88_v37 = vsel %vm746_vm8, %v81_v32, 0.0 }
  0x92   :  { %119 = vst [vmem:[#allocation2 + $0x20] sm:$0xf] %v117_v34  ;;  %120 = vst [vmem:[#allocation2 + $0x28] sm:$0xf] %v118_v35 }
  0x93   :  { %89 = vst [vmem:[#allocation2] sm:$0xf] %v87_v36  ;;  %90 = vst [vmem:[#allocation2 + $0x8] sm:$0xf] %v88_v37  ;;  %v124_v38 = vpop.permute.xlu1 %123  ;;  %v122_v39 = vpop.permute.xlu0 %121 }
  0x94   :  { %v126_v40 = vsel %vm125_vm10, %v122_v39, %v124_v38  ;;  %v127_v41 = vsel %vm125_vm10, %v124_v38, %v122_v39  ;;  %v201_v48 = vld [vmem:[#allocation2 + $0x18] sm:$0xff] }
  0x95   :  { %v132_v42 = vsel %vm722_vm3, %v127_v41, 0.0  ;;  %v133_v43 = vsel %vm746_vm8, %v126_v40, 0.0  ;;  %v200_v53 = vld [vmem:[#allocation2 + $0x10] sm:$0xff] }
  0x96   :  { %134 = vst [vmem:[#allocation2 + $0x30] sm:$0xf] %v132_v42  ;;  %135 = vst [vmem:[#allocation2 + $0x38] sm:$0xf] %v133_v43 }
  0x97   :  { %v141_v44 = vpop.permute.xlu1 %140  ;;  %v139_v45 = vpop.permute.xlu0 %138 }
  0x98   :  { %v143_v46 = vsel %vm142_vm11, %v139_v45, %v141_v44  ;;  %v144_v47 = vsel %vm142_vm11, %v141_v44, %v139_v45 }
  0x99   :  { %v149_v49 = vsel %vm718_vm2, %v143_v46, 0.0  ;;  %v150_v50 = vsel %vm742_vm7, %v144_v47, 0.0  ;;  %v203_v60 = vld [vmem:[#allocation2 + $0x28] sm:$0xff]  ;;  %v202_v1 = vld [vmem:[#allocation2 + $0x20] sm:$0xff] }
  0x9a   :  { %v199_v51 = vld [vmem:[#allocation2 + $0x8] sm:$0xff]  ;;  %v198_v52 = vld [vmem:[#allocation2] sm:$0xff]  ;;  %151 = vst [vmem:[#allocation2 + $0x50] sm:$0xf] %v149_v49  ;;  %152 = vst [vmem:[#allocation2 + $0x58] sm:$0xf] %v150_v50 }
  0x9b   :  { %v523_v54 = vpack.c.bf16 %v201_v48, %v199_v51  ;;  %v525_v55 = vpack.c.bf16 %v200_v53, %v198_v52  ;;  %v322_v56 = vpop.permute.xlu1 %321  ;;  %v320_v57 = vpop.permute.xlu0 %319 }
  0x9c   :  { %v323_v58 = vsel %vm80_vm6, %v320_v57, %v322_v56  ;;  %v324_v59 = vsel %vm80_vm6, %v322_v56, %v320_v57 }
  0x9d   :  { %524 = vmatprep.subr.bf16.mxu0 %v523_v54  ;;  %v325_v61 = vsel %vm754_vm9, %v324_v59, 0.0  ;;  %v326_v62 = vsel %vm746_vm8, %v323_v58, 0.0  ;;  %v205_v63 = vld [vmem:[#allocation2 + $0x38] sm:$0xff]  ;;  %v204_v2 = vld [vmem:[#allocation2 + $0x30] sm:$0xff] }
  0x9e   :  { %526 = vmatpush1.bf16.msra.mxu0 %v525_v55  ;;  %328 = vst [vmem:[#allocation2 + $0x8] sm:$0xf] %v326_v62  ;;  %327 = vst [vmem:[#allocation2] sm:$0xf] %v325_v61  ;;  %v527_v3 = vpack.c.bf16 %v205_v63, %v203_v60  ;;  %v529_v4 = vpack.c.bf16 %v204_v2, %v202_v1 }
  0x9f   :  { %v332_v7 = vpop.permute.xlu1 %331  ;;  %v330_v8 = vpop.permute.xlu0 %329 }
  0xa0   :  { %v333_v9 = vsel %vm95_vm0, %v330_v8, %v332_v7  ;;  %v334_v10 = vsel %vm95_vm0, %v332_v7, %v330_v8  ;;  %528 = vmatprep.subr.bf16.mxu0 %v527_v3  ;;  %vm187_vm0 = vcmp.lt.s32.totalorder %v709_v11, 111 }
  0xa1   :  { %v335_v13 = vsel %vm52_vm1, %v334_v10, 0.0  ;;  %338 = vst [vmem:[#allocation2 + $0x18] sm:$0xf] %v333_v9  ;;  %v209_v14 = vld [vmem:[#allocation2 + $0x58] sm:$0xff]  ;;  %v208_v15 = vld [vmem:[#allocation2 + $0x50] sm:$0xff]  ;;  %vm862_vm1 = vmand %vm63_vm12, %vm742_vm7 }
  0xa2   :  { %530 = vmatpush1.bf16.msra.mxu0 %v529_v4  ;;  %337 = vst [vmem:[#allocation2 + $0x10] sm:$0xf] %v335_v13  ;;  %v531_v18 = vpack.c.bf16 %v209_v14, %v697_v5  ;;  %v533_v19 = vpack.c.bf16 %v208_v15, %v699_v6 }
  0xa3   :  { %v156_v21 = vpop.permute.xlu1 %155  ;;  %v154_v22 = vpop.permute.xlu0 %153 }
  0xa4   :  { %v158_v23 = vsel %vm157_vm13, %v154_v22, %v156_v21  ;;  %v159_v27 = vsel %vm157_vm13, %v156_v21, %v154_v22  ;;  %532 = vmatprep.subr.bf16.mxu0 %v531_v18  ;;  %v410_v18 = vld [vmem:[#allocation2 + $0x48] sm:$0xff] }
  0xa5   :  { %v164_v28 = vsel %vm722_vm3, %v158_v23, 0.0  ;;  %v165_v29 = vsel %vm812_vm14, %v159_v27, 0.0  ;;  %v402_v32 = vld [vmem:[#allocation2 + $0x8] sm:$0xff]  ;;  %v401_v36 = vld [vmem:[#allocation2] sm:$0xff] }
  0xa6   :  { %534 = vmatpush1.bf16.msra.mxu0 %v533_v19  ;;  %166 = vst [vmem:[#allocation2 + $0x60] sm:$0xf] %v164_v28  ;;  %167 = vst [vmem:[#allocation2 + $0x68] sm:$0xf] %v165_v29  ;;  %v409_v19 = vld [vmem:[#allocation2 + $0x40] sm:$0xff] }
  0xa7   :  { %v171_v5 = vpop.permute.xlu1 %170  ;;  %v169_v6 = vpop.permute.xlu0 %168 }
  0xa8   :  { %v173_v30 = vsel %vm172_vm15, %v169_v6, %v171_v5  ;;  %v174_v31 = vsel %vm172_vm15, %v171_v5, %v169_v6  ;;  %v404_v33 = vld [vmem:[#allocation2 + $0x18] sm:$0xff] }
  0xa9   :  { %v180_v34 = vsel %vm63_vm12, %v174_v31, 0.0  ;;  %181 = vst [vmem:[#allocation2 + $0x70] sm:$0xf] %v173_v30  ;;  %v539_v35 = vpack.c.bf16 %v404_v33, %v402_v32  ;;  %v403_v37 = vld [vmem:[#allocation2 + $0x10] sm:$0xff] }
  0xaa   :  { %182 = vst [vmem:[#allocation2 + $0x78] sm:$0xf] %v180_v34  ;;  %v541_v38 = vpack.c.bf16 %v403_v37, %v401_v36 }
  0xab   :  { %v342_v39 = vpop.permute.xlu1 %341  ;;  %v340_v40 = vpop.permute.xlu0 %339  ;;  %540 = vmatprep.subr.bf16.mxu1 %v539_v35  ;;  %v68_v35 = vld [vmem:[#allocation3] sm:$0xff] }
  0xac   :  { %v343_v41 = vsel %vm110_vm5, %v340_v40, %v342_v39  ;;  %v344_v42 = vsel %vm110_vm5, %v342_v39, %v340_v40  ;;  %542 = vmatpush1.bf16.msra.mxu1 %v541_v38 }
  0xad   :  { %v345_v43 = vsel %vm736_vm4, %v344_v42, 0.0  ;;  %v346_v44 = vsel %vm742_vm7, %v343_v41, 0.0  ;;  %v211_v51 = vld [vmem:[#allocation2 + $0x68] sm:$0xff]  ;;  %v210_v54 = vld [vmem:[#allocation2 + $0x60] sm:$0xff]  ;;  %v69_v41 = vld [vmem:[#allocation3 + $0x8] sm:$0xff] }
  0xae   :  { %347 = vst [vmem:[#allocation2 + $0x20] sm:$0xf] %v345_v43  ;;  %348 = vst [vmem:[#allocation2 + $0x28] sm:$0xf] %v346_v44 }
  0xaf   :  { %v352_v45 = vpop.permute.xlu1 %351  ;;  %v350_v46 = vpop.permute.xlu0 %349 }
  0xb0   :  { %v353_v47 = vsel %vm125_vm10, %v350_v46, %v352_v45  ;;  %v354_v48 = vsel %vm125_vm10, %v352_v45, %v350_v46  ;;  %v212_v49 = vld [vmem:[#allocation2 + $0x70] sm:$0xff] }
  0xb1   :  { %v355_v50 = vsel %vm722_vm3, %v354_v48, 0.0  ;;  %v356_v24 = vsel %vm746_vm8, %v353_v47, 0.0  ;;  %v213_v52 = vld [vmem:[#allocation2 + $0x78] sm:$0xff]  ;;  %v537_v57 = vpack.c.bf16 %v212_v49, %v210_v54 }
  0xb2   :  { %357 = vst [vmem:[#allocation2 + $0x30] sm:$0xf] %v355_v50  ;;  %358 = vst [vmem:[#allocation2 + $0x38] sm:$0xf] %v356_v24  ;;  %v535_v53 = vpack.c.bf16 %v213_v52, %v211_v51 }
  0xb3   :  { %v364_v55 = vpop.permute.xlu1 %363  ;;  %v362_v56 = vpop.permute.xlu0 %361 }
  0xb4   :  { %v365_v58 = vsel %vm142_vm11, %v362_v56, %v364_v55  ;;  %v366_v59 = vsel %vm142_vm11, %v364_v55, %v362_v56  ;;  %536 = vmatprep.subr.bf16.mxu0 %v535_v53 }
  0xb5   :  { %v367_v26 = vsel %vm718_vm2, %v365_v58, 0.0  ;;  %v368_v60 = vsel %vm742_vm7, %v366_v59, 0.0  ;;  %538 = vmatpush1.bf16.msra.mxu0 %v537_v57  ;;  %v406_v3 = vld [vmem:[#allocation2 + $0x28] sm:$0xff]  ;;  %v405_v8 = vld [vmem:[#allocation2 + $0x20] sm:$0xff] }
  0xb6   :  { %369 = vst [vmem:[#allocation2 + $0x50] sm:$0xf] %v367_v26  ;;  %370 = vst [vmem:[#allocation2 + $0x58] sm:$0xf] %v368_v60 }
  0xb7   :  { %v186_v62 = vpop.permute.xlu1 %185  ;;  %v184_v63 = vpop.permute.xlu0 %183 }
  0xb8   :  { %v188_v1 = vsel %vm187_vm0, %v184_v63, %v186_v62  ;;  %v189_v2 = vsel %vm187_vm0, %v186_v62, %v184_v63 }
  0xb9   :  { %v194_v4 = vsel %vm718_vm2, %v188_v1, 0.0  ;;  %v195_v25 = vsel %vm862_vm1, %v189_v2, 0.0  ;;  %v408_v7 = vld [vmem:[#allocation2 + $0x38] sm:$0xff]  ;;  %v407_v9 = vld [vmem:[#allocation2 + $0x30] sm:$0xff] }
  0xba   :  { %196 = vst [vmem:[#allocation2 + $0x80] sm:$0xf] %v194_v4  ;;  %197 = vst [vmem:[#allocation2 + $0x88] sm:$0xf] %v195_v25  ;;  %v543_v10 = vpack.c.bf16 %v408_v7, %v406_v3  ;;  %v545_v13 = vpack.c.bf16 %v407_v9, %v405_v8 }
  0xbb   :  { %v374_v14 = vpop.permute.xlu1 %373  ;;  %v372_v15 = vpop.permute.xlu0 %371 }
  0xbc   :  { %v375_v21 = vsel %vm157_vm13, %v372_v15, %v374_v14  ;;  %v376_v22 = vsel %vm157_vm13, %v374_v14, %v372_v15  ;;  %544 = vmatprep.subr.bf16.mxu1 %v543_v10 }
  0xbd   :  { %v377_v23 = vsel %vm722_vm3, %v375_v21, 0.0  ;;  %v378_v27 = vsel %vm812_vm14, %v376_v22, 0.0  ;;  %546 = vmatpush1.bf16.msra.mxu1 %v545_v13  ;;  %v412_v28 = vld [vmem:[#allocation2 + $0x58] sm:$0xff]  ;;  %v411_v29 = vld [vmem:[#allocation2 + $0x50] sm:$0xff]  ;;  %vm226_vm3 = vcmask 588800  }
  0xbe   :  { %379 = vst [vmem:[#allocation2 + $0x60] sm:$0xf] %v377_v23  ;;  %380 = vst [vmem:[#allocation2 + $0x68] sm:$0xf] %v378_v27  ;;  %v547_v5 = vpack.c.bf16 %v412_v28, %v410_v18  ;;  %v549_v6 = vpack.c.bf16 %v411_v29, %v409_v19 }
  0xbf   :  { %v384_v30 = vpop.permute.xlu1 %383  ;;  %v382_v31 = vpop.permute.xlu0 %381 }
  0xc0   :  { %v385_v32 = vsel %vm172_vm15, %v382_v31, %v384_v30  ;;  %v386_v33 = vsel %vm172_vm15, %v384_v30, %v382_v31  ;;  %548 = vmatprep.subr.bf16.mxu1 %v547_v5 }
  0xc1   :  { %v388_v20 = vsel %vm63_vm12, %v386_v33, 0.0  ;;  %389 = vst [vmem:[#allocation2 + $0x70] sm:$0xf] %v385_v32  ;;  %550 = vmatpush1.bf16.msra.mxu1 %v549_v6  ;;  %v215_v16 = vld [vmem:[#allocation2 + $0x88] sm:$0xff]  ;;  %v214_v34 = vld [vmem:[#allocation2 + $0x80] sm:$0xff] }
  0xc2   :  { %390 = vst [vmem:[#allocation2 + $0x78] sm:$0xf] %v388_v20  ;;  %249 = vmatprep.subr.mxu0 %v215_v16 }
  0xc3   :  { %250 = vmatpush1.msra.mxu0 %v214_v34  ;;  %v394_v36 = vpop.permute.xlu1 %393  ;;  %v392_v37 = vpop.permute.xlu0 %391 }
  0xc4   :  { %v395_v38 = vsel %vm187_vm0, %v392_v37, %v394_v36  ;;  %v396_v39 = vsel %vm187_vm0, %v394_v36, %v392_v37  ;;  %518 = vmatmul.mubr.msk.f32.vlgmr.msra.gmra.mrb[0].mxu0 %vm226_vm3, %v68_v35 }
  0xc5   :  { %v397_v12 = vsel %vm718_vm2, %v395_v38, 0.0  ;;  %v398_v40 = vsel %vm862_vm1, %v396_v39, 0.0  ;;  %303 = vmatprep.mubr.f32.mxu0 %v625_v0  ;;  %v414_v43 = vld [vmem:[#allocation2 + $0x68] sm:$0xff]  ;;  %v413_v45 = vld [vmem:[#allocation2 + $0x60] sm:$0xff] }
  0xc6   :  { %399 = vst [vmem:[#allocation2 + $0x80] sm:$0xf] %v397_v12  ;;  %400 = vst [vmem:[#allocation2 + $0x88] sm:$0xf] %v398_v40 }
  0xc8   :  { %v415_v42 = vld [vmem:[#allocation2 + $0x70] sm:$0xff]  ;;  %519 = vmatmul.mubr.msk.f32.gmra.mrb[2].mxu0 %vm226_vm3, %v69_v41 }
  0xc9   :  { %v416_v44 = vld [vmem:[#allocation2 + $0x78] sm:$0xff]  ;;  %v553_v46 = vpack.c.bf16 %v415_v42, %v413_v45 }
  0xca   :  { %v551_v11 = vpack.c.bf16 %v416_v44, %v414_v43 }
  0xcc   :  { %552 = vmatprep.subr.bf16.mxu1 %v551_v11 }
  0xcd   :  { %554 = vmatpush1.bf16.msra.mxu1 %v553_v46  ;;  %v418_v17 = vld [vmem:[#allocation2 + $0x88] sm:$0xff]  ;;  %v417_v47 = vld [vmem:[#allocation2 + $0x80] sm:$0xff] }
  0xce   :  { %435 = vmatprep.subr.mxu1 %v418_v17 }
  0xd1   :  { %436 = vmatpush1.msra.mxu1 %v417_v47 }
  0xd2   :  { %521 = vmatmul.mubr.msk.f32.vlgmr.msra.gmra.mrb[0].mxu1 %vm226_vm3, %v68_v35 }
  0xd3   :  { %489 = vmatprep.mubr.f32.mxu1 %v625_v0 }
  0xd4   :  { %v219_v49 = vpop.permute.xlu0 %218  ;;  %v224_v24 = vpop.permute.xlu1 %223 }
  0xd6   :  { %522 = vmatmul.mubr.msk.f32.gmra.mrb[2].mxu1 %vm226_vm3, %v69_v41 }
 0x197   :  { %v299_v48 = vpop.f32.mrb[0].mxu0 }
 0x198   :  { %v301_v50 = vpop.f32.mrb[1].mxu0  ;;  %v300_v51 = vadd.f32 %v299_v48, %v219_v49 }
 0x199   :  { %v302_v53 = vadd.f32 %v301_v50, %v219_v49 }
 0x19b   :  { %v305_v52 = vpop.f32.mrb[2].mxu0 }
 0x19c   :  { %v306_v54 = vadd.f32 %v305_v52, %v224_v24  ;;  %v307_v55 = vpop.f32.mrb[3].mxu0 }
 0x19d   :  { %v308_v56 = vadd.f32 %v307_v55, %v224_v24 }
 0x19e   :  { %v310_v57 = vmax.f32 %v300_v51, %v306_v54 }
 0x19f   :  { %v311_v58 = vmax.f32 %v302_v53, %v308_v56 }
 0x1a0   :  { %312 = vst [vmem:[#allocation6] sm:$0xff] %v310_v57 }
 0x1a1   :  { %313 = vst [vmem:[#allocation6 + $0x8] sm:$0xff] %v311_v58 }
 0x1a5   :  { %v485_v59 = vpop.f32.mrb[0].mxu1 }
 0x1a6   :  { %v487_v26 = vpop.f32.mrb[1].mxu1  ;;  %v486_v0 = vadd.f32 %v485_v59, %v219_v49 }
 0x1a7   :  { %v488_v63 = vadd.f32 %v487_v26, %v219_v49 }
 0x1a9   :  { %v491_v60 = vpop.f32.mrb[2].mxu1 }
 0x1aa   :  { %v492_v61 = vadd.f32 %v491_v60, %v224_v24  ;;  %v493_v62 = vpop.f32.mrb[3].mxu1 }
 0x1ab   :  { %v494_v1 = vadd.f32 %v493_v62, %v224_v24 }
 0x1ac   :  { %v496_v2 = vmax.f32 %v486_v0, %v492_v61 }
 0x1ad   :  { %v497_v3 = vmax.f32 %v488_v63, %v494_v1 }
 0x1ae   :  { %499 = vst [vmem:[#allocation6 + $0x10] sm:$0xff] %v496_v2 }
 0x1af   :  { %500 = vst [vmem:[#allocation6 + $0x18] sm:$0xff] %v497_v3 }
 0x1b0   :  { %607 = shalt.err (!%p604_p12)
}
 0x1b1   :  { %s608_s17 = scalar_lea.hbm %s918_s3, 512 }
 0x1b2   :  { %p609_p13 = scmp.ne.s32.totalorder %s918_s3, %s608_s17  ;;  %p612_p0 = scmp.lt.u32.totalorder %s608_s17, %s918_s3 }
 0x1b4   :  { %p614_p1 = pnand %p612_p0, %p609_p13 }
 0x1b6   :  { %617 = shalt.err (!%p614_p1)
}
 0x1b7   :  { %s636_s22 = smov 256  }
 0x1b8   :  { %512 = dma.vmem_to_hbm [thread:$0]  %s507_s13, 512, %s918_s3, [#allocation5], %s636_s22, %s636_s22, %s626_s27  }
 0x1b9   :  { %620 = dma.done.wait [#allocation5], 512  }
 0x1ba   :  { %621 = vsyncadd [#allocation5], 4294966784 }
 0x1bb   :  { %516 = vsyncpa [#allocation4], 1 }
 0x1bc   :  { %517 = vsyncpa [#allocation5], 1 }

</bundles_post_ra>
